<compile_context>
chip_gen: v6e
topology: v6e:2x2x1
jax: 0.10.0
libtpu: 0.0.40
codegen_flags: <defaults>
</compile_context>

<pallas_src>
import functools

import jax
import jax.numpy as jnp
from jax.scipy.linalg import block_diag
from jax.experimental import pallas as pl
from jax.experimental.pallas import tpu as pltpu


def _round_up(n, m):
    return ((n + m - 1) // m) * m


# ----------------------------------------------------------------------------
# Kernel: one fused (a_dim + 1)-block MLP; psi combine is folded into W3.
# ----------------------------------------------------------------------------
def _psi_critic_kernel(x_ref, w1_ref, b1_ref, w2_ref, b2_ref, w3_ref, b3_ref,
                       out_ref):
    wdt = w1_ref.dtype                      # bf16 (or f32) packed weights
    x = x_ref[...]                          # (bm, S) f32

    # Layer 1: (bm, S) @ (S, (A+1)F) -- bf16 operands, f32 accumulate.
    h = jnp.dot(x.astype(wdt), w1_ref[...],
                preferred_element_type=jnp.float32) + b1_ref[...]
    h = jnp.maximum(h, 0.0)                 # bias/ReLU kept in f32 (v5e-safe)

    # Layer 2: block-diagonal ((A+1)F, (A+1)F).
    h = jnp.dot(h.astype(wdt), w2_ref[...],
                preferred_element_type=jnp.float32) + b2_ref[...]
    h = jnp.maximum(h, 0.0)

    # Layer 3 emits the full lane-dense slab [adv | state | psi]: (bm, (2A+1)S).
    out = jnp.dot(h.astype(wdt), w3_ref[...],
                  preferred_element_type=jnp.float32) + b3_ref[...]

    out_ref[...] = out.astype(out_ref.dtype)   # single unmasked full-width store


# ----------------------------------------------------------------------------
# One-time per-option packing (plain-JAX glue; keep the result persistent).
# ----------------------------------------------------------------------------
def pack_option_params(params, z, *, weight_dtype=jnp.bfloat16):
    """Select option z and pack all (a_dim + 1) MLPs into one block-diagonal
    3-matmul chain whose layer-3 output is the slab [adv | state | psi]."""
    w1a, b1a = params["w1a"][z], params["b1a"][z]   # (A,S,F), (A,F)
    w2a, b2a = params["w2a"][z], params["b2a"][z]   # (A,F,F), (A,F)
    w3a, b3a = params["w3a"][z], params["b3a"][z]   # (A,F,S), (A,S)
    w1s, b1s = params["w1s"][z], params["b1s"][z]   # (S,F), (1,F)
    w2s, b2s = params["w2s"][z], params["b2s"][z]   # (F,F), (1,F)
    w3s, b3s = params["w3s"][z], params["b3s"][z]   # (F,S), (1,S)

    a_dim, S, F = w1a.shape
    hid = (a_dim + 1) * F

    # TODO(synk): for large (a_dim+1)*fc the dense block-diag w2/w3 grows as hid^2
    # (VMEM hazard on v7x's 64 MiB) -- switch layers 2/3 to grouped einsum
    # ('bgf,gfh->bgh') or a K-tiled grid when scaling fc/a_dim; for v5e at scale,
    # also pad hid to a multiple of 128 with zero columns.

    # Layer 1: shared input -> concatenated output columns  (S, (A+1)F).
    w1 = jnp.concatenate([w1a[a] for a in range(a_dim)] + [w1s], axis=1)
    b1 = jnp.concatenate([b1a[a] for a in range(a_dim)] + [b1s.reshape(-1)])[None, :]

    # Layer 2: independent blocks -> block-diagonal (exact zeros off-block).
    w2 = block_diag(*([w2a[a] for a in range(a_dim)] + [w2s]))
    b2 = jnp.concatenate([b2a[a] for a in range(a_dim)] + [b2s.reshape(-1)])[None, :]

    # Layer 3 with the psi combine folded in.
    #   hidden layout : [ act block 0 | ... | act block A-1 | state block ]  (F each)
    #   output layout : [ adv (A*S) | state (S) | psi (A*S) ]
    # adv columns: block-diagonal w3a; the state hidden block contributes nothing.
    w3_adv = jnp.zeros((hid, a_dim * S), jnp.float32)
    for a in range(a_dim):
        w3_adv = w3_adv.at[a * F:(a + 1) * F, a * S:(a + 1) * S].set(w3a[a])
    b3_adv = jnp.concatenate([b3a[a] for a in range(a_dim)])

    # state columns: only the state hidden block contributes.
    w3_state = jnp.zeros((hid, S), jnp.float32).at[a_dim * F:, :].set(w3s)
    b3_state = b3s.reshape(-1)

    # psi columns for output action a:
    #   hidden action block a' contributes w3a[a'] * (delta_{a,a'} - 1/A)
    #   state hidden block contributes w3s
    #   bias = b3a[a] - mean_a'(b3a) + b3s
    b3a_mean = jnp.mean(b3a, axis=0)
    psi_w_blocks, psi_b_blocks = [], []
    for a in range(a_dim):
        cols = jnp.zeros((hid, S), jnp.float32)
        for ap in range(a_dim):
            coef = (1.0 if ap == a else 0.0) - 1.0 / a_dim
            cols = cols.at[ap * F:(ap + 1) * F, :].set(coef * w3a[ap])
        cols = cols.at[a_dim * F:, :].set(w3s)
        psi_w_blocks.append(cols)
        psi_b_blocks.append(b3a[a] - b3a_mean + b3s.reshape(-1))
    w3_psi = jnp.concatenate(psi_w_blocks, axis=1)
    b3_psi = jnp.concatenate(psi_b_blocks)

    w3 = jnp.concatenate([w3_adv, w3_state, w3_psi], axis=1)   # (hid, (2A+1)S)
    b3 = jnp.concatenate([b3_adv, b3_state, b3_psi])[None, :]

    return {
        # bf16 weights (half the DMA, native MXU path); f32 biases (VPU adds).
        "w1": w1.astype(weight_dtype), "b1": b1.astype(jnp.float32),
        "w2": w2.astype(weight_dtype), "b2": b2.astype(jnp.float32),
        "w3": w3.astype(weight_dtype), "b3": b3.astype(jnp.float32),
        "a_dim": int(a_dim), "sf_dim": int(S), "fc_dim": int(F),
    }


# ----------------------------------------------------------------------------
# Forward wrapper.
# ----------------------------------------------------------------------------
def psi_critic2_forward(x, packed, *, bm=None):
    """x: (B, sf_dim) float32.  packed: output of pack_option_params."""
    B, S = x.shape
    a_dim = packed["a_dim"]
    w1, b1, w2, b2, w3, b3 = (packed[k] for k in ("w1", "b1", "w2", "b2", "w3", "b3"))

    hid = w1.shape[1]                  # (A+1)*fc
    out_w = w3.shape[1]                # (2A+1)*S  -> [adv | state | psi]
    adv_w = a_dim * S

    # Batch tile: >=2 grid steps when B>=16 (dual TensorCores on v7x), tile
    # capped at 512 rows, multiple of 8 sublanes.
    if bm is None:
        bm = B if B < 16 else min(512, _round_up(pl.cdiv(B, 2), 8))
    grid = (pl.cdiv(B, bm),)

    def row_spec(cols):
        return pl.BlockSpec((bm, cols), lambda i: (i, 0))

    def full_spec(shape):
        nd = len(shape)

        def idx(i):
            return (0,) * nd

        # Weight block indices never change across the grid: single-buffer them.
        try:
            return pl.BlockSpec(shape, idx, pipeline_mode=pl.Buffered(1))
        except TypeError:  # older jax without pipeline_mode on BlockSpec
            return pl.BlockSpec(shape, idx)

    wbytes = sum(int(a.size) * a.dtype.itemsize for a in (w1, b1, w2, b2, w3, b3))
    flops = 2 * B * (S * hid + hid * hid + hid * out_w) + 4 * B * hid + 2 * B * out_w
    bytes_accessed = int(x.size * x.dtype.itemsize + wbytes + 4 * B * out_w)

    # TODO(synk): if the caller evaluates several options z (or several small
    # batches/timesteps) per step, stack packed weights over options and add an
    # option grid axis so everything runs in one pallas_call (the kernel is
    # launch/latency bound at these sizes).
    out = pl.pallas_call(
        _psi_critic_kernel,
        out_shape=jax.ShapeDtypeStruct((B, out_w), jnp.float32),
        grid=grid,
        in_specs=[
            row_spec(S),
            full_spec(w1.shape), full_spec(b1.shape),
            full_spec(w2.shape), full_spec(b2.shape),
            full_spec(w3.shape), full_spec(b3.shape),
        ],
        out_specs=row_spec(out_w),
        compiler_params=pltpu.CompilerParams(
            dimension_semantics=("parallel",)),
        cost_estimate=pl.CostEstimate(
            flops=flops, transcendentals=0, bytes_accessed=bytes_accessed),
    )(x, w1, b1, w2, b2, w3, b3)

    # Lane-dense slab -> caller views (cheap XLA glue outside the kernel).
    psi_adv = out[:, :adv_w].reshape(B, a_dim, S)
    psi_state = out[:, adv_w:adv_w + S]
    psi = out[:, adv_w + S:].reshape(B, a_dim, S)
    return psi, {"psiState": psi_state, "psiAdvantage": psi_adv}


# ----------------------------------------------------------------------------
# Parameter init (shapes match PsiCritic2.__init__) and pure-JAX reference.
# ----------------------------------------------------------------------------
def init_params(key, fc_dim, sf_dim, a_dim, num_options):
    ks = jax.random.split(key, 12)
    s = 0.1

    def rnd(k, shape):
        return jax.random.normal(k, shape, dtype=jnp.float32) * s

    return {
        # advantage MLPs: one per (option, action)
        "w1a": rnd(ks[0], (num_options, a_dim, sf_dim, fc_dim)),
        "b1a": rnd(ks[1], (num_options, a_dim, fc_dim)),
        "w2a": rnd(ks[2], (num_options, a_dim, fc_dim, fc_dim)),
        "b2a": rnd(ks[3], (num_options, a_dim, fc_dim)),
        "w3a": rnd(ks[4], (num_options, a_dim, fc_dim, sf_dim)),
        "b3a": rnd(ks[5], (num_options, a_dim, sf_dim)),
        # state MLPs: one per option
        "w1s": rnd(ks[6], (num_options, sf_dim, fc_dim)),
        "b1s": rnd(ks[7], (num_options, 1, fc_dim)),
        "w2s": rnd(ks[8], (num_options, fc_dim, fc_dim)),
        "b2s": rnd(ks[9], (num_options, 1, fc_dim)),
        "w3s": rnd(ks[10], (num_options, fc_dim, sf_dim)),
        "b3s": rnd(ks[11], (num_options, 1, sf_dim)),
    }


def _reference_forward(x, params, z):
    def mlp(inp, w1, b1, w2, b2, w3, b3):
        h = jnp.maximum(inp @ w1 + b1, 0.0)
        h = jnp.maximum(h @ w2 + b2, 0.0)
        return h @ w3 + b3

    advs = []
    for a in range(params["w1a"].shape[1]):
        advs.append(mlp(x,
                        params["w1a"][z, a], params["b1a"][z, a],
                        params["w2a"][z, a], params["b2a"][z, a],
                        params["w3a"][z, a], params["b3a"][z, a]))
    psi_adv = jnp.stack(advs, axis=1)
    psi_state = mlp(x,
                    params["w1s"][z], params["b1s"][z],
                    params["w2s"][z], params["b2s"][z],
                    params["w3s"][z], params["b3s"][z])
    psi = psi_state[:, None, :] + psi_adv - jnp.mean(psi_adv, axis=1, keepdims=True)
    return psi, psi_state, psi_adv


if __name__ == "__main__":
    B, sf_dim, fc_dim, a_dim, num_options = 8, 32, 32, 4, 2
    z = 1

    key = jax.random.PRNGKey(0)
    kx, kp = jax.random.split(key)
    x = jax.random.normal(kx, (B, sf_dim), dtype=jnp.float32)
    params = init_params(kp, fc_dim, sf_dim, a_dim, num_options)

    # Pack once (persistent per-option layout, bf16 weights), reuse every call.
    packed = pack_option_params(params, z)
    packed = jax.tree_util.tree_map(
        lambda v: jax.block_until_ready(v) if isinstance(v, jax.Array) else v, packed)

    psi, aux = psi_critic2_forward(x, packed)
    jax.block_until_ready(psi)
    jax.block_until_ready(aux["psiState"])
    jax.block_until_ready(aux["psiAdvantage"])

    # Sanity check against pure-JAX f32 reference (unpacked params).
    # Tolerance loosened because packed weights are stored in bf16.
    psi_ref, psi_state_ref, psi_adv_ref = _reference_forward(x, params, z)
    assert jnp.allclose(psi, psi_ref, atol=3e-2, rtol=3e-2)
    assert jnp.allclose(aux["psiState"], psi_state_ref, atol=3e-2, rtol=3e-2)
    assert jnp.allclose(aux["psiAdvantage"], psi_adv_ref, atol=3e-2, rtol=3e-2)

    print("KERNEL_OK")
</pallas_src>

<mosaic_0001>
module attributes {stable_mosaic.version = 11 : i64} {
  func.func @_psi_critic_kernel(%arg0: i32, %arg1: memref<8x32xf32, #tpu.memory_space<vmem>>, %arg2: memref<32x160xbf16, #tpu.memory_space<vmem>>, %arg3: memref<1x160xf32, #tpu.memory_space<vmem>>, %arg4: memref<160x160xbf16, #tpu.memory_space<vmem>>, %arg5: memref<1x160xf32, #tpu.memory_space<vmem>>, %arg6: memref<160x288xbf16, #tpu.memory_space<vmem>>, %arg7: memref<1x288xf32, #tpu.memory_space<vmem>>, %arg8: memref<8x288xf32, #tpu.memory_space<vmem>>) attributes {dimension_semantics = [#tpu.dimension_semantics<parallel>], iteration_bounds = array<i64: 1>, scalar_prefetch = 0 : i64, scratch_operands = 0 : i64, tpu.core_type = #tpu.core_type<tc>, window_params = [{transform_indices = @transform_0, window_bounds = array<i64: 8, 32>}, {pipeline_mode = #tpu.pipeline_mode<synchronous>, transform_indices = @transform_1, window_bounds = array<i64: 32, 160>}, {pipeline_mode = #tpu.pipeline_mode<synchronous>, transform_indices = @transform_2, window_bounds = array<i64: 1, 160>}, {pipeline_mode = #tpu.pipeline_mode<synchronous>, transform_indices = @transform_3, window_bounds = array<i64: 160, 160>}, {pipeline_mode = #tpu.pipeline_mode<synchronous>, transform_indices = @transform_4, window_bounds = array<i64: 1, 160>}, {pipeline_mode = #tpu.pipeline_mode<synchronous>, transform_indices = @transform_5, window_bounds = array<i64: 160, 288>}, {pipeline_mode = #tpu.pipeline_mode<synchronous>, transform_indices = @transform_6, window_bounds = array<i64: 1, 288>}, {transform_indices = @transform_7, window_bounds = array<i64: 8, 288>}]} {
    %c0 = arith.constant 0 : index
    %c0_0 = arith.constant 0 : index
    %0 = vector.load %arg1[%c0, %c0_0] : memref<8x32xf32, #tpu.memory_space<vmem>>, vector<8x32xf32>
    %1 = arith.truncf %0 : vector<8x32xf32> to vector<8x32xbf16>
    %c0_1 = arith.constant 0 : index
    %c0_2 = arith.constant 0 : index
    %2 = vector.load %arg2[%c0_1, %c0_2] : memref<32x160xbf16, #tpu.memory_space<vmem>>, vector<32x160xbf16>
    %cst = arith.constant dense<0.000000e+00> : vector<8x160xf32>
    %3 = tpu.matmul %1, %2, %cst {dimension_numbers = #tpu.dot_dimension_numbers<[1], [0], [0], [1], [0, 0, 1, 1], [], []>} : vector<8x32xbf16>, vector<32x160xbf16>, vector<8x160xf32> -> vector<8x160xf32>
    %c0_3 = arith.constant 0 : index
    %c0_4 = arith.constant 0 : index
    %4 = vector.load %arg3[%c0_3, %c0_4] : memref<1x160xf32, #tpu.memory_space<vmem>>, vector<1x160xf32>
    %5 = vector.broadcast %4 : vector<1x160xf32> to vector<8x160xf32>
    %6 = arith.addf %3, %5 : vector<8x160xf32>
    %cst_5 = arith.constant 0.000000e+00 : f32
    %7 = vector.broadcast %cst_5 : f32 to vector<8x160xf32>
    %8 = arith.maximumf %6, %7 : vector<8x160xf32>
    %9 = arith.truncf %8 : vector<8x160xf32> to vector<8x160xbf16>
    %c0_6 = arith.constant 0 : index
    %c0_7 = arith.constant 0 : index
    %10 = vector.load %arg4[%c0_6, %c0_7] : memref<160x160xbf16, #tpu.memory_space<vmem>>, vector<160x160xbf16>
    %cst_8 = arith.constant dense<0.000000e+00> : vector<8x160xf32>
    %11 = tpu.matmul %9, %10, %cst_8 {dimension_numbers = #tpu.dot_dimension_numbers<[1], [0], [0], [1], [0, 0, 1, 1], [], []>} : vector<8x160xbf16>, vector<160x160xbf16>, vector<8x160xf32> -> vector<8x160xf32>
    %c0_9 = arith.constant 0 : index
    %c0_10 = arith.constant 0 : index
    %12 = vector.load %arg5[%c0_9, %c0_10] : memref<1x160xf32, #tpu.memory_space<vmem>>, vector<1x160xf32>
    %13 = vector.broadcast %12 : vector<1x160xf32> to vector<8x160xf32>
    %14 = arith.addf %11, %13 : vector<8x160xf32>
    %cst_11 = arith.constant 0.000000e+00 : f32
    %15 = vector.broadcast %cst_11 : f32 to vector<8x160xf32>
    %16 = arith.maximumf %14, %15 : vector<8x160xf32>
    %17 = arith.truncf %16 : vector<8x160xf32> to vector<8x160xbf16>
    %c0_12 = arith.constant 0 : index
    %c0_13 = arith.constant 0 : index
    %18 = vector.load %arg6[%c0_12, %c0_13] : memref<160x288xbf16, #tpu.memory_space<vmem>>, vector<160x288xbf16>
    %cst_14 = arith.constant dense<0.000000e+00> : vector<8x288xf32>
    %19 = tpu.matmul %17, %18, %cst_14 {dimension_numbers = #tpu.dot_dimension_numbers<[1], [0], [0], [1], [0, 0, 1, 1], [], []>} : vector<8x160xbf16>, vector<160x288xbf16>, vector<8x288xf32> -> vector<8x288xf32>
    %c0_15 = arith.constant 0 : index
    %c0_16 = arith.constant 0 : index
    %20 = vector.load %arg7[%c0_15, %c0_16] : memref<1x288xf32, #tpu.memory_space<vmem>>, vector<1x288xf32>
    %21 = vector.broadcast %20 : vector<1x288xf32> to vector<8x288xf32>
    %22 = arith.addf %19, %21 : vector<8x288xf32>
    %c0_17 = arith.constant 0 : index
    %c0_18 = arith.constant 0 : index
    %23 = vector.load %arg8[%c0_17, %c0_18] : memref<8x288xf32, #tpu.memory_space<vmem>>, vector<8x288xf32>
    tpu.vector_store %arg8[%c0_17, %c0_18], %22 {strides = array<i32>} : memref<8x288xf32, #tpu.memory_space<vmem>>, vector<8x288xf32>,
    return
  }
  func.func @transform_0(%arg0: i32) -> (i32, i32) {
    %c0_i32 = arith.constant 0 : i32
    %c0_i32_0 = arith.constant 0 : i32
    return %arg0, %c0_i32 : i32, i32
  }
  func.func @transform_1(%arg0: i32) -> (i32, i32) {
    %c0_i32 = arith.constant 0 : i32
    %c0_i32_0 = arith.constant 0 : i32
    %c0_i32_1 = arith.constant 0 : i32
    return %c0_i32, %c0_i32_0 : i32, i32
  }
  func.func @transform_2(%arg0: i32) -> (i32, i32) {
    %c0_i32 = arith.constant 0 : i32
    %c0_i32_0 = arith.constant 0 : i32
    %c0_i32_1 = arith.constant 0 : i32
    return %c0_i32, %c0_i32_0 : i32, i32
  }
  func.func @transform_3(%arg0: i32) -> (i32, i32) {
    %c0_i32 = arith.constant 0 : i32
    %c0_i32_0 = arith.constant 0 : i32
    %c0_i32_1 = arith.constant 0 : i32
    return %c0_i32, %c0_i32_0 : i32, i32
  }
  func.func @transform_4(%arg0: i32) -> (i32, i32) {
    %c0_i32 = arith.constant 0 : i32
    %c0_i32_0 = arith.constant 0 : i32
    %c0_i32_1 = arith.constant 0 : i32
    return %c0_i32, %c0_i32_0 : i32, i32
  }
  func.func @transform_5(%arg0: i32) -> (i32, i32) {
    %c0_i32 = arith.constant 0 : i32
    %c0_i32_0 = arith.constant 0 : i32
    %c0_i32_1 = arith.constant 0 : i32
    return %c0_i32, %c0_i32_0 : i32, i32
  }
  func.func @transform_6(%arg0: i32) -> (i32, i32) {
    %c0_i32 = arith.constant 0 : i32
    %c0_i32_0 = arith.constant 0 : i32
    %c0_i32_1 = arith.constant 0 : i32
    return %c0_i32, %c0_i32_0 : i32, i32
  }
  func.func @transform_7(%arg0: i32) -> (i32, i32) {
    %c0_i32 = arith.constant 0 : i32
    %c0_i32_0 = arith.constant 0 : i32
    return %arg0, %c0_i32 : i32, i32
  }
}

</mosaic_0001>

<bundles_post_ra>
// kernel: tpu_custom_call.1
= control target key start
LH: loop header
LB: loop body
LE: loop exit
PB: predicated region body
PF: predicated region fallthrough
CT: control target
= control target key end

     0   :  { %12 = vsyncpa [#allocation3], 0  ;;  %s1026_s0 = inlined_call_operand.hbm [shape: f32[8,32], index: 0, kind: input, shape index: {}]   ;;  %s1027_s1 = inlined_call_operand.hbm [shape: bf16[32,160], index: 1, kind: input, shape index: {}]   ;;  %s1028_s2 = inlined_call_operand.vmem [shape: f32[1,160], index: 2, kind: input, shape index: {}]   ;;  %s1029_s3 = inlined_call_operand.hbm [shape: bf16[160,160], index: 3, kind: input, shape index: {}]   ;;  %s1030_s4 = inlined_call_operand.vmem [shape: f32[1,160], index: 4, kind: input, shape index: {}]   ;;  %s1031_s5 = inlined_call_operand.hbm [shape: bf16[160,288], index: 5, kind: input, shape index: {}]   ;;  %s1032_s6 = inlined_call_operand.vmem [shape: f32[1,288], index: 6, kind: input, shape index: {}]   ;;  %s1033_s7 = inlined_call_operand.hbm [shape: f32[8,288], index: 7, kind: output, shape index: {}]  }
   0x1   :  { %13 = vsyncpa [#allocation6], 0 }
   0x2   :  { %14 = vsyncpa [#allocation9], 0 }
   0x3   :  { %15 = vsyncpa [#allocation4], 0  ;;  %s921_s24 = smov [#allocation5]  }
   0x4   :  { %s31_s25 = sshll.u32 %s921_s24, 4  ;;  %s32_s25 = int_to_ptr.vmem [resolvable:$true] %s31_s25 }
   0x5   :  { %s821_s26 = scalar_lea.vmem %s32_s25, 512  ;;  %p826_p1 = scmp.lt.s32.totalorder %s32_s25, %s32_s25 }
   0x6   :  { %p822_p0 = scmp.ne.s32.totalorder %s32_s25, %s821_s26  ;;  %p827_p2 = scmp.lt.s32.totalorder %s821_s26, %s821_s26 }
   0x8   :  { %p828_p3 = por %p827_p2, %p826_p1 }
   0xa   :  { %p829_p4 = pnand %p828_p3, %p822_p0 }
   0xc   :  { %832 = shalt.err (!%p829_p4)
}
   0xd   :  { %s922_s27 = smov 128   ;;  %s923_s28 = smov 8  }
   0xe   :  { %37 = dma.hbm_to_vmem [thread:$0]  %s1027_s1, 512, %s32_s25, [#allocation6], %s922_s27, %s922_s27, %s923_s28  }
   0xf   :  { %s924_s8 = smov [#allocation2]   ;;  %s925_s10 = smov [#allocation7]  }
  0x10   :  { %s22_s9 = sshll.u32 %s924_s8, 4  ;;  %s45_s11 = sshll.u32 %s925_s10, 4  ;;  %s23_s9 = int_to_ptr.vmem [resolvable:$true] %s22_s9  ;;  %s46_s11 = int_to_ptr.vmem [resolvable:$true] %s45_s11 }
  0x11   :  { %s841_s12 = scalar_lea.vmem %s23_s9, 128  ;;  %p846_p6 = scmp.lt.s32.totalorder %s23_s9, %s23_s9 }
  0x12   :  { %p842_p5 = scmp.ne.s32.totalorder %s23_s9, %s841_s12  ;;  %p847_p7 = scmp.lt.s32.totalorder %s841_s12, %s841_s12 }
  0x14   :  { %p848_p8 = por %p847_p7, %p846_p6 }
  0x16   :  { %p849_p9 = pnand %p848_p8, %p842_p5 }
  0x18   :  { %852 = shalt.err (!%p849_p9)
}
  0x19   :  { %25 = dma.hbm_to_vmem [thread:$0]  %s1026_s0, 128, %s23_s9, [#allocation3]  }
  0x1a   :  { %s861_s15 = scalar_lea.vmem %s46_s11, 2560  ;;  %p866_p11 = scmp.lt.s32.totalorder %s46_s11, %s46_s11 }
  0x1b   :  { %p862_p10 = scmp.ne.s32.totalorder %s46_s11, %s861_s15  ;;  %p867_p12 = scmp.lt.s32.totalorder %s861_s15, %s861_s15 }
  0x1d   :  { %p868_p13 = por %p867_p12, %p866_p11 }
  0x1f   :  { %p869_p0 = pnand %p868_p13, %p862_p10 }
  0x21   :  { %872 = shalt.err (!%p869_p0)
}
  0x22   :  { %51 = dma.hbm_to_vmem [thread:$0]  %s1029_s3, 2560, %s46_s11, [#allocation6], %s922_s27, %s922_s27, %s923_s28  }
  0x23   :  { %s926_s17 = smov [#allocation8]  }
  0x24   :  { %s59_s18 = sshll.u32 %s926_s17, 4  ;;  %s60_s18 = int_to_ptr.vmem [resolvable:$true] %s59_s18 }
  0x25   :  { %s881_s19 = scalar_lea.vmem %s60_s18, 3840  ;;  %p886_p2 = scmp.lt.s32.totalorder %s60_s18, %s60_s18 }
  0x26   :  { %p882_p1 = scmp.ne.s32.totalorder %s60_s18, %s881_s19  ;;  %p887_p3 = scmp.lt.s32.totalorder %s881_s19, %s881_s19 }
  0x28   :  { %p888_p4 = por %p887_p3, %p886_p2 }
  0x2a   :  { %p889_p5 = pnand %p888_p4, %p882_p1 }
  0x2c   :  { %892 = shalt.err (!%p889_p5)
}
  0x2d   :  { %s927_s0 = smov 192   ;;  %s928_s20 = smov 12  }
  0x2e   :  { %65 = dma.hbm_to_vmem [thread:$0]  %s1031_s5, 3840, %s60_s18, [#allocation9], %s927_s0, %s927_s0, %s928_s20  }
  0x2f   :  { %913 = dma.done.wait [#allocation3], 128  }
  0x30   :  { %914 = vsyncadd [#allocation3], 4294967168 }
  0x31   :  { %915 = dma.done.wait [#allocation6], 3072  }
  0x32   :  { %916 = vsyncadd [#allocation6], 4294964224 }
  0x33   :  { %917 = dma.done.wait [#allocation9], 3840  }
  0x34   :  { %918 = vsyncadd [#allocation9], 4294963456  ;;  %v929_v0 = vmov 0   ;;  %v737_v1 = vld [vmem:[#allocation5 + $0x14] ss:$8 sps:$4 sm:$0xff]   ;;  %vm119_vm0 = vcmask 261120   ;;  %v89_v43 = vlaneseq }
  0x35   :  { %155 = vmatprep.mubr.bf16.mxu0 %v929_v0  ;;  %v739_v2 = vld [vmem:[#allocation5 + $0x10] ss:$8 sps:$4 sm:$0xff]   ;;  %135 = vmatprep.subr.bf16.mxu0 %v737_v1  ;;  %v740_v3 = vld [vmem:[#allocation5 + $0x4] ss:$8 sps:$4 sm:$0xff]   ;;  %v742_v4 = vld [vmem:[#allocation5] ss:$8 sps:$4 sm:$0xff]  }
  0x36   :  { %v81_v5 = vld [vmem:[#allocation2] sm:$0xff]  ;;  %136 = vmatpush1.bf16.msra.mxu0 %v739_v2  ;;  %v746_v8 = vld [vmem:[#allocation7 + $0x64] ss:$8 sps:$4 sm:$0xff]   ;;  %v748_v10 = vld [vmem:[#allocation7 + $0x60] ss:$8 sps:$4 sm:$0xff]   ;;  %v986_v44 = vshrl.u32 %v89_v43, 7 }
  0x37   :  { %v743_v6 = vld [vmem:[#allocation7 + $0x74] ss:$8 sps:$4 sm:$0xff]   ;;  %137 = vmatprep.subr.bf16.mxu0 %v740_v3  ;;  %v745_v7 = vld [vmem:[#allocation7 + $0x70] ss:$8 sps:$4 sm:$0xff]   ;;  %v82_v9 = vpack.c.bf16 %v81_v5, %v81_v5  ;;  %v752_v13 = vld [vmem:[#allocation7 + $0x44] ss:$8 sps:$4 sm:$0xff]  }
  0x38   :  { %303 = vmatprep.subr.bf16.mxu1 %v743_v6  ;;  %v749_v11 = vld [vmem:[#allocation7 + $0x54] ss:$8 sps:$4 sm:$0xff]   ;;  %v751_v12 = vld [vmem:[#allocation7 + $0x50] ss:$8 sps:$4 sm:$0xff]   ;;  %v754_v14 = vld [vmem:[#allocation7 + $0x40] ss:$8 sps:$4 sm:$0xff]  }
  0x39   :  { %304 = vmatpush1.bf16.msra.mxu1 %v745_v7  ;;  %v755_v15 = vld [vmem:[#allocation7 + $0x34] ss:$8 sps:$4 sm:$0xff]   ;;  %v757_v16 = vld [vmem:[#allocation7 + $0x30] ss:$8 sps:$4 sm:$0xff]   ;;  %v758_v17 = vld [vmem:[#allocation7 + $0x24] ss:$8 sps:$4 sm:$0xff]  }
  0x3a   :  { %138 = vmatpush1.bf16.msra.mxu0 %v742_v4  ;;  %305 = vmatprep.subr.bf16.mxu1 %v746_v8  ;;  %v760_v18 = vld [vmem:[#allocation7 + $0x20] ss:$8 sps:$4 sm:$0xff]   ;;  %v761_v19 = vld [vmem:[#allocation7 + $0x14] ss:$8 sps:$4 sm:$0xff]   ;;  %v763_v20 = vld [vmem:[#allocation7 + $0x10] ss:$8 sps:$4 sm:$0xff]  }
  0x3b   :  { %v764_v21 = vld [vmem:[#allocation7 + $0x4] ss:$8 sps:$4 sm:$0xff]   ;;  %v766_v22 = vld [vmem:[#allocation7] ss:$8 sps:$4 sm:$0xff]   ;;  %v767_v23 = vld [vmem:[#allocation7 + $0x94] ss:$8 sps:$4 sm:$0xff]  }
  0x3c   :  { %v769_v24 = vld [vmem:[#allocation7 + $0x90] ss:$8 sps:$4 sm:$0xff]   ;;  %v770_v25 = vld [vmem:[#allocation7 + $0x84] ss:$8 sps:$4 sm:$0xff]   ;;  %v772_v26 = vld [vmem:[#allocation7 + $0x80] ss:$8 sps:$4 sm:$0xff]  }
  0x3d   :  { %673 = vmatmul.mubr.msk.bf16.vlgmr.msra.gmra.mxu0 %vm119_vm0, %v82_v9  ;;  %306 = vmatpush1.bf16.msra.mxu1 %v748_v10  ;;  %v773_v27 = vld [vmem:[#allocation8 + $0xa8] ss:$12 sps:$4 sm:$0xff]   ;;  %v775_v28 = vld [vmem:[#allocation8 + $0xac] ss:$12 sps:$4 sm:$0xff]   ;;  %v777_v30 = vld [vmem:[#allocation8 + $0x90] ss:$12 sps:$4 sm:$0xff]  }
  0x3e   :  { %307 = vmatprep.subr.bf16.mxu1 %v749_v11  ;;  %v779_v29 = vld [vmem:[#allocation8 + $0x94] ss:$12 sps:$4 sm:$0xff]   ;;  %568 = vmatprep.subr.bf16.mxu0 %v775_v28  ;;  %v783_v31 = vld [vmem:[#allocation8 + $0x7c] ss:$12 sps:$4 sm:$0xff]   ;;  %v781_v32 = vld [vmem:[#allocation8 + $0x78] ss:$12 sps:$4 sm:$0xff]  }
  0x3f   :  { %569 = vmatpush1.bf16.msra.mxu0 %v773_v27  ;;  %v787_v33 = vld [vmem:[#allocation8 + $0x64] ss:$12 sps:$4 sm:$0xff]   ;;  %v785_v34 = vld [vmem:[#allocation8 + $0x60] ss:$12 sps:$4 sm:$0xff]   ;;  %v789_v36 = vld [vmem:[#allocation8 + $0x48] ss:$12 sps:$4 sm:$0xff]  }
  0x40   :  { %570 = vmatprep.subr.bf16.mxu0 %v779_v29  ;;  %v791_v35 = vld [vmem:[#allocation8 + $0x4c] ss:$12 sps:$4 sm:$0xff]   ;;  %v795_v37 = vld [vmem:[#allocation8 + $0x34] ss:$12 sps:$4 sm:$0xff]   ;;  %v793_v38 = vld [vmem:[#allocation8 + $0x30] ss:$12 sps:$4 sm:$0xff]  }
  0x41   :  { %308 = vmatpush1.bf16.msra.mxu1 %v751_v12  ;;  %v799_v39 = vld [vmem:[#allocation8 + $0x1c] ss:$12 sps:$4 sm:$0xff]   ;;  %v797_v40 = vld [vmem:[#allocation8 + $0x18] ss:$12 sps:$4 sm:$0xff]   ;;  %v801_v42 = vld [vmem:[#allocation8] ss:$12 sps:$4 sm:$0xff]  }
  0x42   :  { %309 = vmatprep.subr.bf16.mxu1 %v752_v13  ;;  %v803_v41 = vld [vmem:[#allocation8 + $0x4] ss:$12 sps:$4 sm:$0xff]   ;;  %v989_v45 = vsub.s32 0, %v986_v44  ;;  %v87_v46 = vld [vmem:[%s1028_s2] sm:$0x3]  ;;  %v995_v47 = vsub.s32 1, %v986_v44 }
  0x43   :  { %571 = vmatpush1.bf16.msra.mxu0 %v777_v30  ;;  %v776_v59 = vld [vmem:[#allocation8 + $0xb0] ss:$12 sps:$4 sm:$0xff]   ;;  %v780_v61 = vld [vmem:[#allocation8 + $0x98] ss:$12 sps:$4 sm:$0xff]   ;;  %v784_v62 = vld [vmem:[#allocation8 + $0x80] ss:$12 sps:$4 sm:$0xff]  }
  0x44   :  { %572 = vmatprep.subr.bf16.mxu0 %v783_v31  ;;  %v92_v48 = vrot.slane %v87_v46, %v989_v45  ;;  %v96_v49 = vrot.slane %v87_v46, %v995_v47  ;;  %v788_v63 = vld [vmem:[#allocation8 + $0x68] ss:$12 sps:$4 sm:$0xff]   ;;  %v792_v1 = vld [vmem:[#allocation8 + $0x50] ss:$12 sps:$4 sm:$0xff]   ;;  %v796_v2 = vld [vmem:[#allocation8 + $0x38] ss:$12 sps:$4 sm:$0xff]  }
  0x45   :  { %310 = vmatpush1.bf16.msra.mxu1 %v754_v14  ;;  %v800_v3 = vld [vmem:[#allocation8 + $0x20] ss:$12 sps:$4 sm:$0xff]   ;;  %v804_v4 = vld [vmem:[#allocation8 + $0x8] ss:$12 sps:$4 sm:$0xff]   ;;  %v805_v6 = vld [vmem:[#allocation8 + $0xd8] ss:$12 sps:$4 sm:$0xff]  }
  0x46   :  { %311 = vmatprep.subr.bf16.mxu1 %v755_v15  ;;  %v807_v5 = vld [vmem:[#allocation8 + $0xdc] ss:$12 sps:$4 sm:$0xff]   ;;  %v808_v7 = vld [vmem:[#allocation8 + $0xe0] ss:$12 sps:$4 sm:$0xff]   ;;  %v811_v8 = vld [vmem:[#allocation8 + $0xc4] ss:$12 sps:$4 sm:$0xff]  }
  0x47   :  { %573 = vmatpush1.bf16.msra.mxu0 %v781_v32  ;;  %v809_v9 = vld [vmem:[#allocation8 + $0xc0] ss:$12 sps:$4 sm:$0xff]   ;;  %v812_v10 = vld [vmem:[#allocation8 + $0xc8] ss:$12 sps:$4 sm:$0xff]   ;;  %v188_v11 = vld [vmem:[%s1030_s4] sm:$0x3] }
  0x48   :  { %574 = vmatprep.subr.bf16.mxu0 %v787_v33  ;;  %v193_v12 = vrot.slane %v188_v11, %v989_v45  ;;  %v197_v13 = vrot.slane %v188_v11, %v995_v47  ;;  %s930_s25 = smov [#allocation10]  }
  0x49   :  { %312 = vmatpush1.bf16.msra.mxu1 %v757_v16  ;;  %s658_s26 = sshll.u32 %s930_s25, 4  ;;  %s659_s26 = int_to_ptr.vmem [resolvable:$true] %s658_s26 }
  0x4a   :  { %313 = vmatprep.subr.bf16.mxu1 %v758_v17  ;;  %p898_p7 = scmp.lt.s32.totalorder %s659_s26, %s659_s26 }
  0x4b   :  { %575 = vmatpush1.bf16.msra.mxu0 %v785_v34 }
  0x4c   :  { %576 = vmatprep.subr.bf16.mxu0 %v791_v35 }
  0x4d   :  { %314 = vmatpush1.bf16.msra.mxu1 %v760_v18 }
  0x4e   :  { %315 = vmatprep.subr.bf16.mxu1 %v761_v19 }
  0x4f   :  { %577 = vmatpush1.bf16.msra.mxu0 %v789_v36 }
  0x50   :  { %578 = vmatprep.subr.bf16.mxu0 %v795_v37 }
  0x51   :  { %316 = vmatpush1.bf16.msra.mxu1 %v763_v20 }
  0x52   :  { %317 = vmatprep.subr.bf16.mxu1 %v764_v21 }
  0x53   :  { %579 = vmatpush1.bf16.msra.mxu0 %v793_v38 }
  0x54   :  { %580 = vmatprep.subr.bf16.mxu0 %v799_v39 }
  0x55   :  { %318 = vmatpush1.bf16.msra.mxu1 %v766_v22 }
  0x56   :  { %331 = vmatprep.subr.bf16.mxu1 %v767_v23  ;;  %v400_v23 = vsub.s32 2, %v986_v44 }
  0x57   :  { %581 = vmatpush1.bf16.msra.mxu0 %v797_v40 }
  0x58   :  { %582 = vmatprep.subr.bf16.mxu0 %v803_v41 }
  0x59   :  { %332 = vmatpush2.bf16.msra.mxu1 %v769_v24  ;;  %v388_v24 = vld [vmem:[%s1032_s6] sm:$0x7]  ;;  %s893_s6 = scalar_lea.vmem %s659_s26, 384 }
  0x5a   :  { %333 = vmatprep.subr.bf16.mxu1 %v770_v25  ;;  %v393_v25 = vrot.slane %v388_v24, %v989_v45  ;;  %v397_v27 = vrot.slane %v388_v24, %v995_v47  ;;  %p894_p6 = scmp.ne.s32.totalorder %s659_s26, %s893_s6  ;;  %p899_p8 = scmp.lt.s32.totalorder %s893_s6, %s893_s6 }
  0x5b   :  { %583 = vmatpush1.bf16.msra.mxu0 %v801_v42 }
  0x5c   :  { %596 = vmatprep.subr.bf16.mxu0 %v807_v5  ;;  %p900_p9 = por %p899_p8, %p898_p7 }
  0x5d   :  { %334 = vmatpush2.bf16.msra.mxu1 %v772_v26  ;;  %v401_v26 = vrot.slane %v388_v24, %v400_v23 }
  0x5e   :  { %609 = vmatprep.subr.bf16.mxu1 %v929_v0  ;;  %p901_p10 = pnand %p900_p9, %p894_p6 }
  0x5f   :  { %597 = vmatpush2.bf16.msra.mxu0 %v805_v6 }
  0x60   :  { %598 = vmatprep.subr.bf16.mxu0 %v811_v8 }
  0x63   :  { %599 = vmatpush2.bf16.msra.mxu0 %v809_v9 }
  0xfd   :  { %v157_v50 = vpop.f32.mrf.mxu0 }
  0xfe   :  { %v158_v51 = vadd.f32 %v157_v50, %v92_v48 }
  0xff   :  { %v159_v52 = vpop.f32.mrf.mxu0 }
 0x100   :  { %v160_v53 = vadd.f32 %v159_v52, %v96_v49  ;;  %v164_v54 = vmax.f32 %v158_v51, 0.0 }
 0x101   :  { %v161_v55 = vpop.f32.mrf.mxu0 }
 0x102   :  { %v165_v56 = vmax.f32 %v160_v53, 0.0  ;;  %v166_v60 = vpack.c.bf16 %v164_v54, %v164_v54 }
 0x103   :  { %v162_v57 = vpop.f32.mrf.mxu0 }
 0x104   :  { %v167_v58 = vpack.c.bf16 %v165_v56, %v165_v56 }
 0x106   :  { %694 = vmatprep.mubr.msk.bf16.mxu1 %vm119_vm0, %v167_v58 }
 0x107   :  { %336 = vmatmul.mubr.bf16.vlgmr.msra.gmra.mxu1 %v166_v60 }
 0x108   :  { %610 = vmatpush1.bf16.msra.mxu1 %v776_v59 }
 0x109   :  { %611 = vmatprep.subr.bf16.mxu1 %v929_v0 }
 0x10c   :  { %612 = vmatpush1.bf16.msra.mxu1 %v780_v61 }
 0x10d   :  { %613 = vmatprep.subr.bf16.mxu1 %v929_v0 }
 0x110   :  { %614 = vmatpush1.bf16.msra.mxu1 %v784_v62 }
 0x111   :  { %615 = vmatprep.subr.bf16.mxu1 %v929_v0 }
 0x114   :  { %616 = vmatpush1.bf16.msra.mxu1 %v788_v63 }
 0x115   :  { %617 = vmatprep.subr.bf16.mxu1 %v929_v0 }
 0x118   :  { %618 = vmatpush1.bf16.msra.mxu1 %v792_v1 }
 0x119   :  { %619 = vmatprep.subr.bf16.mxu1 %v929_v0 }
 0x11c   :  { %620 = vmatpush1.bf16.msra.mxu1 %v796_v2 }
 0x11d   :  { %621 = vmatprep.subr.bf16.mxu1 %v929_v0 }
 0x120   :  { %622 = vmatpush1.bf16.msra.mxu1 %v800_v3 }
 0x121   :  { %623 = vmatprep.subr.bf16.mxu1 %v929_v0 }
 0x124   :  { %624 = vmatpush1.bf16.msra.mxu1 %v804_v4 }
 0x125   :  { %637 = vmatprep.subr.bf16.mxu1 %v929_v0 }
 0x128   :  { %638 = vmatpush2.bf16.msra.mxu1 %v808_v7 }
 0x129   :  { %639 = vmatprep.subr.bf16.mxu1 %v929_v0 }
 0x12c   :  { %640 = vmatpush2.bf16.msra.mxu1 %v812_v10 }
 0x1c7   :  { %v337_v14 = vpop.f32.mrf.mxu1 }
 0x1c8   :  { %v338_v15 = vadd.f32 %v337_v14, %v193_v12 }
 0x1c9   :  { %v339_v16 = vpop.f32.mrf.mxu1 }
 0x1ca   :  { %v340_v17 = vadd.f32 %v339_v16, %v197_v13  ;;  %v344_v18 = vmax.f32 %v338_v15, 0.0 }
 0x1cb   :  { %v341_v19 = vpop.f32.mrf.mxu1 }
 0x1cc   :  { %v345_v0 = vmax.f32 %v340_v17, 0.0  ;;  %v346_v22 = vpack.c.bf16 %v344_v18, %v344_v18 }
 0x1cd   :  { %v342_v20 = vpop.f32.mrf.mxu1 }
 0x1ce   :  { %v347_v21 = vpack.c.bf16 %v345_v0, %v345_v0 }
 0x1d0   :  { %725 = vmatprep.mubr.msk.bf16.mxu0 %vm119_vm0, %v347_v21  ;;  %726 = vmatprep.mubr.msk.bf16.mxu1 %vm119_vm0, %v347_v21 }
 0x1d1   :  { %601 = vmatmul.mubr.bf16.vlgmr.msra.gmra.mxu0 %v346_v22  ;;  %642 = vmatmul.mubr.bf16.vlgmr.msra.gmra.mxu1 %v346_v22 }
 0x291   :  { %v602_v28 = vpop.f32.mrf.mxu0  ;;  %v643_v29 = vpop.f32.mrf.mxu1 }
 0x292   :  { %v603_v30 = vadd.f32 %v602_v28, %v393_v25  ;;  %v644_v31 = vadd.f32 %v643_v29, %v401_v26 }
 0x293   :  { %v604_v32 = vpop.f32.mrf.mxu0  ;;  %v645_v33 = vpop.f32.mrf.mxu1 }
 0x294   :  { %649 = vst [vmem:[#allocation10] sm:$0xff] %v603_v30  ;;  %651 = vst.msk [vmem:[#allocation10 + $0x10] sm:$0xff] %vm119_vm0, %v644_v31  ;;  %v605_v34 = vadd.f32 %v604_v32, %v397_v27 }
 0x295   :  { %v606_v35 = vpop.f32.mrf.mxu0  ;;  %v646_v36 = vpop.f32.mrf.mxu1 }
 0x296   :  { %650 = vst [vmem:[#allocation10 + $0x8] sm:$0xff] %v605_v34 }
 0x297   :  { %v607_v37 = vpop.f32.mrf.mxu0  ;;  %v647_v38 = vpop.f32.mrf.mxu1 }
 0x298   :  { %904 = shalt.err (!%p901_p10)
}
 0x299   :  { %661 = dma.vmem_to_hbm [thread:$0]  %s659_s26, 384, %s1033_s7, [#allocation4]  }
 0x29a   :  { %919 = dma.done.wait [#allocation4], 384  }
 0x29b   :  { %920 = vsyncadd [#allocation4], 4294966912 }
 0x29c   :  { %665 = vsyncpa [#allocation3], 1 }
 0x29d   :  { %666 = vsyncpa [#allocation6], 1 }
 0x29e   :  { %667 = vsyncpa [#allocation9], 1 }
 0x29f   :  { %668 = vsyncpa [#allocation4], 1 }

</bundles_post_ra>
